<compile_context>
chip_gen: v5e
topology: v5e:2x2
jax: 0.10.0
libtpu: 0.0.40
codegen_flags: <defaults>
</compile_context>

<pallas_src>
import functools

import jax
import jax.numpy as jnp
from jax import lax
from jax.experimental import pallas as pl
from jax.experimental.pallas import tpu as pltpu

NEG_SLOPE = 0.01  # nn.LeakyReLU default


def _leaky_relu(x):
    return jnp.where(x > 0, x, NEG_SLOPE * x)


def _mlp_kernel(x_ref, w1_ref, b1_ref, w2_ref, b2_ref, w3_ref, b3_ref,
                w4_ref, b4_ref, o_ref, *, matmul_dtype):
    """Fused 4-layer MLP on one batch tile, computed feature-major.

    x_ref : (bb, F)   natural (batch, feature) layout, no host transpose
    w1: (32, F)  b1: (32, 1)     w2: (16, 32) b2: (16, 1)
    w3: (8, 16)  b3: (8, 1)      w4: (8, 1)   b4: (1, 1)
    o_ref : (1, bb)  lane-dense sigmoid output row (batch on lanes)
    """
    x = x_ref[...].astype(matmul_dtype)                               # (bb, F)

    # Layer 1: contract on the feature axis of BOTH operands -> (32, bb).
    # Mosaic folds the rhs transpose into the MXU feed (no in-VMEM relayout).
    h = lax.dot_general(w1_ref[...], x,
                        dimension_numbers=(((1,), (1,)), ((), ())),
                        preferred_element_type=jnp.float32)
    h = _leaky_relu(h + b1_ref[...])                                  # (32, bb) f32

    h = jnp.dot(w2_ref[...], h.astype(matmul_dtype),
                preferred_element_type=jnp.float32)
    h = _leaky_relu(h + b2_ref[...])                                  # (16, bb) f32

    h = jnp.dot(w3_ref[...], h.astype(matmul_dtype),
                preferred_element_type=jnp.float32)
    h = _leaky_relu(h + b3_ref[...])                                  # (8, bb) f32

    # Last layer (8 -> 1): VPU multiply + sublane reduce instead of a
    # single-column MXU matmul.  All f32.
    z = jnp.sum(h * w4_ref[...], axis=0, keepdims=True) + b4_ref[...]  # (1, bb)

    # Sigmoid: exp on the EUP, approx reciprocal also on the EUP slot.
    o_ref[...] = pl.reciprocal(1.0 + jnp.exp(-z), approx=True).astype(o_ref.dtype)


def _choose_block(batch, requested):
    """Pick a lane-aligned (multiple-of-128) batch tile.

    - batch <= 128: one full-extent block (block == array dims is allowed).
    - batch  > 128: never a single grid step (feeds both v7x TensorCores),
      preferring a tile that divides `batch` exactly so no padding is needed.
    """
    if batch <= 128:
        return batch
    half = max(128, ((batch // 2) // 128) * 128)
    cap = max(128, (min(requested, half) // 128) * 128)
    for cand in range(cap, 127, -128):         # largest divisor first
        if batch % cand == 0:
            return cand
    return cap                                  # no exact divisor -> pad batch


def _whole(a):
    """Full-array BlockSpec with a constant block index (resident in VMEM)."""
    nd = a.ndim
    return pl.BlockSpec(a.shape, lambda i, _nd=nd: (0,) * _nd)


@functools.partial(jax.jit, static_argnames=("block_b", "matmul_dtype"))
def net_forward(x, params, *, block_b=16384, matmul_dtype=jnp.float32):
    """x: (B, F) float32 (or bf16). params: weights (out, in), biases (out, 1);
    last layer weight stored as an (8, 1) column.  Returns (B, 1) float32."""
    B, F = x.shape

    # Matmul operands may be bf16 (v6e/v7x win); biases / last layer stay f32.
    w1 = params["w1"].astype(matmul_dtype)
    w2 = params["w2"].astype(matmul_dtype)
    w3 = params["w3"].astype(matmul_dtype)
    b1, b2, b3 = params["b1"], params["b2"], params["b3"]
    w4, b4 = params["w4"], params["b4"]

    bb = _choose_block(B, block_b)
    n_steps = pl.cdiv(B, bb)
    B_pad = n_steps * bb
    if B_pad != B:
        # Keep every block fully in-bounds (no ragged tiles).  Only hit when no
        # multiple-of-128 tile divides B; pad rows are zeros and sliced away.
        x = jnp.pad(x, ((0, B_pad - B), (0, 0)))

    kernel = functools.partial(_mlp_kernel, matmul_dtype=matmul_dtype)

    outT = pl.pallas_call(
        kernel,
        out_shape=jax.ShapeDtypeStruct((1, B_pad), jnp.float32),
        grid=(n_steps,),
        in_specs=[
            pl.BlockSpec((bb, F), lambda i: (i, 0)),   # x tile, no host transpose
            _whole(w1), _whole(b1),
            _whole(w2), _whole(b2),
            _whole(w3), _whole(b3),
            _whole(w4), _whole(b4),
        ],
        out_specs=pl.BlockSpec((1, bb), lambda i: (0, i)),   # lane-dense store
        compiler_params=pltpu.CompilerParams(
            dimension_semantics=("parallel",)),
    )(x, w1, b1, w2, b2, w3, b3, w4, b4)

    return outT[0, :B].reshape(B, 1)


def init_params(key, features):
    """Deterministic init matching nn.Linear (weights kept (out, in))."""
    dims = [features, 32, 16, 8, 1]
    params = {}
    for idx, (fan_in, fan_out) in enumerate(zip(dims[:-1], dims[1:]), start=1):
        key, kw, kb = jax.random.split(key, 3)
        bound = 1.0 / jnp.sqrt(fan_in)
        if idx < 4:
            w_shape = (fan_out, fan_in)   # (out, in), like PyTorch
        else:
            w_shape = (fan_in, fan_out)   # last layer kept as (8, 1) column
        params[f"w{idx}"] = jax.random.uniform(
            kw, w_shape, jnp.float32, -bound, bound)
        params[f"b{idx}"] = jax.random.uniform(
            kb, (fan_out, 1), jnp.float32, -bound, bound)
    return params


def reference_forward(x, params):
    """Pure-JAX reference with the natural (batch, feature) orientation."""
    h = _leaky_relu(x @ params["w1"].T + params["b1"].T)
    h = _leaky_relu(h @ params["w2"].T + params["b2"].T)
    h = _leaky_relu(h @ params["w3"].T + params["b3"].T)
    z = h @ params["w4"] + params["b4"].T                              # (B, 1)
    return 1.0 / (1.0 + jnp.exp(-z))


if __name__ == "__main__":
    key = jax.random.PRNGKey(0)
    features = 16

    kx1, kx2, kx3, kp = jax.random.split(key, 4)
    params = init_params(kp, features)

    # Case 1: tiny batch -> single full block, no padding.
    x_small = jax.random.normal(kx1, (8, features), jnp.float32)
    out_small = jax.block_until_ready(net_forward(x_small, params))
    ref_small = reference_forward(x_small, params)
    assert out_small.shape == (8, 1)
    assert jnp.allclose(out_small, ref_small, atol=1e-3, rtol=1e-3), \
        "mismatch vs reference (small batch)"

    # Case 2: batch not a multiple of the tile -> padded to 384, 3 grid steps.
    x_big = jax.random.normal(kx2, (300, features), jnp.float32)
    out_big = jax.block_until_ready(net_forward(x_big, params, block_b=128))
    ref_big = reference_forward(x_big, params)
    assert out_big.shape == (300, 1)
    assert jnp.allclose(out_big, ref_big, atol=1e-3, rtol=1e-3), \
        "mismatch vs reference (tiled batch)"

    # Case 3: exact multi-step grid with the bf16 MXU path (f32 accumulation).
    x_bf = jax.random.normal(kx3, (512, features), jnp.float32)
    out_bf = jax.block_until_ready(
        net_forward(x_bf, params, block_b=128, matmul_dtype=jnp.bfloat16))
    ref_bf = reference_forward(x_bf, params)
    assert out_bf.shape == (512, 1)
    assert jnp.allclose(out_bf, ref_bf, atol=2e-2, rtol=2e-2), \
        "mismatch vs reference (bf16 matmul path)"

    print("KERNEL_OK")
</pallas_src>

<mosaic_0001>
module attributes {stable_mosaic.version = 11 : i64} {
  func.func @_mlp_kernel(%arg0: i32, %arg1: memref<8x16xf32, #tpu.memory_space<vmem>>, %arg2: memref<32x16xf32, #tpu.memory_space<vmem>>, %arg3: memref<32x1xf32, #tpu.memory_space<vmem>>, %arg4: memref<16x32xf32, #tpu.memory_space<vmem>>, %arg5: memref<16x1xf32, #tpu.memory_space<vmem>>, %arg6: memref<8x16xf32, #tpu.memory_space<vmem>>, %arg7: memref<8x1xf32, #tpu.memory_space<vmem>>, %arg8: memref<8x1xf32, #tpu.memory_space<vmem>>, %arg9: memref<1x1xf32, #tpu.memory_space<vmem>>, %arg10: memref<1x8xf32, #tpu.memory_space<vmem>>) attributes {dimension_semantics = [#tpu.dimension_semantics<parallel>], iteration_bounds = array<i64: 1>, scalar_prefetch = 0 : i64, scratch_operands = 0 : i64, tpu.core_type = #tpu.core_type<tc>, window_params = [{transform_indices = @transform_0, window_bounds = array<i64: 8, 16>}, {pipeline_mode = #tpu.pipeline_mode<synchronous>, transform_indices = @transform_1, window_bounds = array<i64: 32, 16>}, {pipeline_mode = #tpu.pipeline_mode<synchronous>, transform_indices = @transform_2, window_bounds = array<i64: 32, 1>}, {pipeline_mode = #tpu.pipeline_mode<synchronous>, transform_indices = @transform_3, window_bounds = array<i64: 16, 32>}, {pipeline_mode = #tpu.pipeline_mode<synchronous>, transform_indices = @transform_4, window_bounds = array<i64: 16, 1>}, {pipeline_mode = #tpu.pipeline_mode<synchronous>, transform_indices = @transform_5, window_bounds = array<i64: 8, 16>}, {pipeline_mode = #tpu.pipeline_mode<synchronous>, transform_indices = @transform_6, window_bounds = array<i64: 8, 1>}, {pipeline_mode = #tpu.pipeline_mode<synchronous>, transform_indices = @transform_7, window_bounds = array<i64: 8, 1>}, {pipeline_mode = #tpu.pipeline_mode<synchronous>, transform_indices = @transform_8, window_bounds = array<i64: 1, 1>}, {transform_indices = @transform_9, window_bounds = array<i64: 1, 8>}]} {
    %c0 = arith.constant 0 : index
    %c0_0 = arith.constant 0 : index
    %0 = vector.load %arg1[%c0, %c0_0] : memref<8x16xf32, #tpu.memory_space<vmem>>, vector<8x16xf32>
    %c0_1 = arith.constant 0 : index
    %c0_2 = arith.constant 0 : index
    %1 = vector.load %arg2[%c0_1, %c0_2] : memref<32x16xf32, #tpu.memory_space<vmem>>, vector<32x16xf32>
    %cst = arith.constant dense<0.000000e+00> : vector<32x8xf32>
    %2 = tpu.matmul %1, %0, %cst {dimension_numbers = #tpu.dot_dimension_numbers<[1], [1], [0], [0], [0, 0, 1, 0], [], []>} : vector<32x16xf32>, vector<8x16xf32>, vector<32x8xf32> -> vector<32x8xf32>
    %c0_3 = arith.constant 0 : index
    %c0_4 = arith.constant 0 : index
    %3 = vector.load %arg3[%c0_3, %c0_4] : memref<32x1xf32, #tpu.memory_space<vmem>>, vector<32x1xf32>
    %4 = vector.broadcast %3 : vector<32x1xf32> to vector<32x8xf32>
    %5 = arith.addf %2, %4 : vector<32x8xf32>
    %cst_5 = arith.constant 0.000000e+00 : f32
    %6 = vector.broadcast %cst_5 : f32 to vector<32x8xf32>
    %7 = arith.cmpf ogt, %5, %6 : vector<32x8xf32>
    %cst_6 = arith.constant 0.00999999977 : f32
    %8 = vector.broadcast %cst_6 : f32 to vector<32x8xf32>
    %9 = arith.mulf %8, %5 : vector<32x8xf32>
    %10 = arith.select %7, %5, %9 : vector<32x8xi1>, vector<32x8xf32>
    %c0_7 = arith.constant 0 : index
    %c0_8 = arith.constant 0 : index
    %11 = vector.load %arg4[%c0_7, %c0_8] : memref<16x32xf32, #tpu.memory_space<vmem>>, vector<16x32xf32>
    %cst_9 = arith.constant dense<0.000000e+00> : vector<16x8xf32>
    %12 = tpu.matmul %11, %10, %cst_9 {dimension_numbers = #tpu.dot_dimension_numbers<[1], [0], [0], [1], [0, 0, 1, 1], [], []>} : vector<16x32xf32>, vector<32x8xf32>, vector<16x8xf32> -> vector<16x8xf32>
    %c0_10 = arith.constant 0 : index
    %c0_11 = arith.constant 0 : index
    %13 = vector.load %arg5[%c0_10, %c0_11] : memref<16x1xf32, #tpu.memory_space<vmem>>, vector<16x1xf32>
    %14 = vector.broadcast %13 : vector<16x1xf32> to vector<16x8xf32>
    %15 = arith.addf %12, %14 : vector<16x8xf32>
    %cst_12 = arith.constant 0.000000e+00 : f32
    %16 = vector.broadcast %cst_12 : f32 to vector<16x8xf32>
    %17 = arith.cmpf ogt, %15, %16 : vector<16x8xf32>
    %cst_13 = arith.constant 0.00999999977 : f32
    %18 = vector.broadcast %cst_13 : f32 to vector<16x8xf32>
    %19 = arith.mulf %18, %15 : vector<16x8xf32>
    %20 = arith.select %17, %15, %19 : vector<16x8xi1>, vector<16x8xf32>
    %c0_14 = arith.constant 0 : index
    %c0_15 = arith.constant 0 : index
    %21 = vector.load %arg6[%c0_14, %c0_15] : memref<8x16xf32, #tpu.memory_space<vmem>>, vector<8x16xf32>
    %cst_16 = arith.constant dense<0.000000e+00> : vector<8x8xf32>
    %22 = tpu.matmul %21, %20, %cst_16 {dimension_numbers = #tpu.dot_dimension_numbers<[1], [0], [0], [1], [0, 0, 1, 1], [], []>} : vector<8x16xf32>, vector<16x8xf32>, vector<8x8xf32> -> vector<8x8xf32>
    %c0_17 = arith.constant 0 : index
    %c0_18 = arith.constant 0 : index
    %23 = vector.load %arg7[%c0_17, %c0_18] : memref<8x1xf32, #tpu.memory_space<vmem>>, vector<8x1xf32>
    %24 = vector.broadcast %23 : vector<8x1xf32> to vector<8x8xf32>
    %25 = arith.addf %22, %24 : vector<8x8xf32>
    %cst_19 = arith.constant 0.000000e+00 : f32
    %26 = vector.broadcast %cst_19 : f32 to vector<8x8xf32>
    %27 = arith.cmpf ogt, %25, %26 : vector<8x8xf32>
    %cst_20 = arith.constant 0.00999999977 : f32
    %28 = vector.broadcast %cst_20 : f32 to vector<8x8xf32>
    %29 = arith.mulf %28, %25 : vector<8x8xf32>
    %30 = arith.select %27, %25, %29 : vector<8x8xi1>, vector<8x8xf32>
    %c0_21 = arith.constant 0 : index
    %c0_22 = arith.constant 0 : index
    %31 = vector.load %arg8[%c0_21, %c0_22] : memref<8x1xf32, #tpu.memory_space<vmem>>, vector<8x1xf32>
    %32 = vector.broadcast %31 : vector<8x1xf32> to vector<8x8xf32>
    %33 = arith.mulf %30, %32 : vector<8x8xf32>
    %cst_23 = arith.constant dense<0.000000e+00> : vector<8xf32>
    %34 = vector.multi_reduction <add>, %33, %cst_23 [0] : vector<8x8xf32> to vector<8xf32>
    %35 = vector.shape_cast %34 : vector<8xf32> to vector<1x8xf32>
    %c0_24 = arith.constant 0 : index
    %c0_25 = arith.constant 0 : index
    %36 = vector.load %arg9[%c0_24, %c0_25] : memref<1x1xf32, #tpu.memory_space<vmem>>, vector<1x1xf32>
    %37 = vector.broadcast %36 : vector<1x1xf32> to vector<1x8xf32>
    %38 = arith.addf %35, %37 : vector<1x8xf32>
    %cst_26 = arith.constant 0.000000e+00 : f32
    %39 = vector.broadcast %cst_26 : f32 to vector<1x8xf32>
    %40 = arith.subf %39, %38 : vector<1x8xf32>
    %41 = math.exp %40 : vector<1x8xf32>
    %cst_27 = arith.constant 1.000000e+00 : f32
    %42 = vector.broadcast %cst_27 : f32 to vector<1x8xf32>
    %43 = arith.addf %42, %41 : vector<1x8xf32>
    %44 = tpu.reciprocal %43 {approx = true} : vector<1x8xf32> -> vector<1x8xf32>
    %c0_28 = arith.constant 0 : index
    %c0_29 = arith.constant 0 : index
    %45 = vector.load %arg10[%c0_28, %c0_29] : memref<1x8xf32, #tpu.memory_space<vmem>>, vector<1x8xf32>
    tpu.vector_store %arg10[%c0_28, %c0_29], %44 {strides = array<i32>} : memref<1x8xf32, #tpu.memory_space<vmem>>, vector<1x8xf32>,
    return
  }
  func.func @transform_0(%arg0: i32) -> (i32, i32) {
    %c0_i32 = arith.constant 0 : i32
    %c0_i32_0 = arith.constant 0 : i32
    return %arg0, %c0_i32 : i32, i32
  }
  func.func @transform_1(%arg0: i32) -> (i32, i32) {
    %c0_i32 = arith.constant 0 : i32
    %c0_i32_0 = arith.constant 0 : i32
    %c0_i32_1 = arith.constant 0 : i32
    return %c0_i32, %c0_i32_0 : i32, i32
  }
  func.func @transform_2(%arg0: i32) -> (i32, i32) {
    %c0_i32 = arith.constant 0 : i32
    %c0_i32_0 = arith.constant 0 : i32
    %c0_i32_1 = arith.constant 0 : i32
    return %c0_i32, %c0_i32_0 : i32, i32
  }
  func.func @transform_3(%arg0: i32) -> (i32, i32) {
    %c0_i32 = arith.constant 0 : i32
    %c0_i32_0 = arith.constant 0 : i32
    %c0_i32_1 = arith.constant 0 : i32
    return %c0_i32, %c0_i32_0 : i32, i32
  }
  func.func @transform_4(%arg0: i32) -> (i32, i32) {
    %c0_i32 = arith.constant 0 : i32
    %c0_i32_0 = arith.constant 0 : i32
    %c0_i32_1 = arith.constant 0 : i32
    return %c0_i32, %c0_i32_0 : i32, i32
  }
  func.func @transform_5(%arg0: i32) -> (i32, i32) {
    %c0_i32 = arith.constant 0 : i32
    %c0_i32_0 = arith.constant 0 : i32
    %c0_i32_1 = arith.constant 0 : i32
    return %c0_i32, %c0_i32_0 : i32, i32
  }
  func.func @transform_6(%arg0: i32) -> (i32, i32) {
    %c0_i32 = arith.constant 0 : i32
    %c0_i32_0 = arith.constant 0 : i32
    %c0_i32_1 = arith.constant 0 : i32
    return %c0_i32, %c0_i32_0 : i32, i32
  }
  func.func @transform_7(%arg0: i32) -> (i32, i32) {
    %c0_i32 = arith.constant 0 : i32
    %c0_i32_0 = arith.constant 0 : i32
    %c0_i32_1 = arith.constant 0 : i32
    return %c0_i32, %c0_i32_0 : i32, i32
  }
  func.func @transform_8(%arg0: i32) -> (i32, i32) {
    %c0_i32 = arith.constant 0 : i32
    %c0_i32_0 = arith.constant 0 : i32
    %c0_i32_1 = arith.constant 0 : i32
    return %c0_i32, %c0_i32_0 : i32, i32
  }
  func.func @transform_9(%arg0: i32) -> (i32, i32) {
    %c0_i32 = arith.constant 0 : i32
    %c0_i32_0 = arith.constant 0 : i32
    return %c0_i32, %arg0 : i32, i32
  }
}

</mosaic_0001>

<bundles_post_ra>
// kernel: net_forward.1
= control target key start
LH: loop header
LB: loop body
LE: loop exit
PB: predicated region body
PF: predicated region fallthrough
CT: control target
= control target key end

     0   :  { %s407_s0 = inlined_call_operand.vmem [shape: f32[8,16], index: 0, kind: input, shape index: {}]   ;;  %s408_s1 = inlined_call_operand.vmem [shape: f32[32,16], index: 1, kind: input, shape index: {}]   ;;  %s409_s2 = inlined_call_operand.vmem [shape: f32[32,1], index: 2, kind: input, shape index: {}]   ;;  %s410_s3 = inlined_call_operand.vmem [shape: f32[16,32], index: 3, kind: input, shape index: {}]   ;;  %s411_s4 = inlined_call_operand.vmem [shape: f32[16,1], index: 4, kind: input, shape index: {}]   ;;  %s412_s5 = inlined_call_operand.vmem [shape: f32[8,16], index: 5, kind: input, shape index: {}]   ;;  %s413_s6 = inlined_call_operand.vmem [shape: f32[8,1], index: 6, kind: input, shape index: {}]   ;;  %s414_s7 = inlined_call_operand.vmem [shape: f32[8,1], index: 7, kind: input, shape index: {}]   ;;  %s415_s8 = inlined_call_operand.<no memory space> [shape: f32[1,1], index: 8, kind: input, shape index: {}]   ;;  %s416_s9 = inlined_call_operand.hbm [shape: f32[1,8], index: 9, kind: output, shape index: {}]  }
   0x1   :  { %v14_v0 = vstv %s415_s8 }
   0x2   :  { %15 = vst [vmem:[#allocation2] sm:$0x1] %v14_v0 }
   0x3   :  { %v35_v1 = vld [vmem:[%s407_s0] sm:$0xff]  ;;  %vm64_vm0 = vcmask 130048   ;;  %v38_v2 = vld [vmem:[%s408_s1 + $0x10] sm:$0xff]  ;;  %v43_v4 = vld [vmem:[%s409_s2 + $0x18] sm:$0xff]  ;;  %v294_v6 = vmov 0  }
   0x4   :  { %258 = vmatpush.xpose.msk.msra.mxu3 %vm64_vm0, %v35_v1  ;;  %250 = vmatpush.xpose.msk.msra.mxu0 %vm64_vm0, %v35_v1  ;;  %v36_v3 = vld [vmem:[%s408_s1] sm:$0xff]  ;;  %v41_v5 = vld [vmem:[%s409_s2 + $0x8] sm:$0xff] }
   0x5   :  { %261 = vset.pattern.permute.xlu0 %v294_v6  ;;  %262 = vset.pattern.permute.xlu1 %v294_v6 }
   0x6   :  { %61 = vperm.xlu0 %261, %v43_v4   ;;  %51 = vperm.xlu1 %262, %v41_v5  }
   0x7   :  { %16 = vsyncpa [#allocation4], 0  ;;  %253 = vmatmul.msk.f32.vlgmr.msra.gmra.mxu3 %vm64_vm0, %v38_v2  ;;  %251 = vmatmul.msk.f32.vlgmr.msra.gmra.mxu0 %vm64_vm0, %v36_v3  ;;  %v42_v7 = vld [vmem:[%s409_s2 + $0x10] sm:$0xff]  ;;  %v40_v8 = vld [vmem:[%s409_s2] sm:$0xff]  ;;  %vm135_vm5 = vcmask 261120   ;;  %vm211_vm9 = vcmask 64512  }
   0x8   :  { %263 = vset.pattern.permute.xlu2 %v294_v6  ;;  %v39_v9 = vld [vmem:[%s408_s1 + $0x18] sm:$0xff]  ;;  %v37_v10 = vld [vmem:[%s408_s1 + $0x8] sm:$0xff]  ;;  %v172_v11 = vld [vmem:[%s413_s6] sm:$0xff]  ;;  %s241_s17 = sshll.u32 %s416_s9, 4  ;;  %vm232_vm10 = vcmask 57344   ;;  %s242_s17 = int_to_ptr.hbm [resolvable:$true] %s241_s17 }
   0x9   :  { %v204_v12 = vld [vmem:[%s414_s7] sm:$0xff]  ;;  %v124_v15 = vld [vmem:[%s411_s4 + $0x8] sm:$0xff] }
   0xa   :  { %132 = vperm.xlu2 %263, %v124_v15   ;;  %v123_v18 = vld [vmem:[%s411_s4] sm:$0xff]  ;;  %v122_v37 = vld [vmem:[%s410_s3 + $0x8] sm:$0xff] }
   0xb   :  { %v219_v26 = vld [vmem:[#allocation2] sm:$0x1] }
   0xc   :  { %v121_v35 = vld [vmem:[%s410_s3] sm:$0xff]  ;;  %s295_s3 = smov [#allocation3]  }
   0xd   :  { %v171_v47 = vld [vmem:[%s412_s5] sm:$0xff]  ;;  %s239_s5 = sshll.u32 %s295_s3, 4  ;;  %s240_s5 = int_to_ptr.vmem [resolvable:$true] %s239_s5 }
   0xe   :  { %56 = vperm.xlu0 %261, %v42_v7   ;;  %46 = vperm.xlu1 %262, %v40_v8  }
   0xf   :  { %254 = vmatmul.msk.f32.gmra.mxu3 %vm64_vm0, %v39_v9  ;;  %252 = vmatmul.msk.f32.gmra.mxu0 %vm64_vm0, %v37_v10 }
  0x12   :  { %127 = vperm.xlu2 %263, %v123_v18  }
  0x16   :  { %175 = vperm.xlu0 %261, %v172_v11   ;;  %207 = vperm.xlu1 %262, %v204_v12  }
  0x1a   :  { %222 = vperm.xlu2 %263, %v219_v26  }
  0x64   :  { %v133_v38 = vpop.permute.xlu2 %132 }
  0x6c   :  { %v128_v40 = vpop.permute.xlu2 %127 }
  0x74   :  { %v223_v61 = vpop.permute.xlu2 %222 }
  0x75   :  { %v225_v63 = vperm.slane %v223_v61, 0 }
  0x78   :  { %v62_v13 = vpop.permute.xlu0 %61  ;;  %v52_v16 = vpop.permute.xlu1 %51 }
  0x80   :  { %v57_v19 = vpop.permute.xlu0 %56  ;;  %v47_v25 = vpop.permute.xlu1 %46 }
  0x84   :  { %v97_v14 = vpop.f32.mrf.mxu0 }
  0x85   :  { %v98_v27 = vadd.f32 %v97_v14, %v47_v25 }
  0x87   :  { %v113_v33 = vmul.f32 0.01, %v98_v27  ;;  %vm109_vm4 = vcmp.gt.f32.partialorder %v98_v27, 0.0 }
  0x88   :  { %v176_v49 = vpop.permute.xlu0 %175  ;;  %v208_v53 = vpop.permute.xlu1 %207 }
  0x89   :  { %v117_v36 = vsel %vm109_vm4, %v98_v27, %v113_v33 }
  0x8a   :  { %v103_v17 = vpop.f32.mrf.mxu3 }
  0x8b   :  { %v104_v21 = vadd.f32 %v103_v17, %v57_v19 }
  0x8c   :  { %v100_v20 = vpop.f32.mrf.mxu0 }
  0x8d   :  { %v101_v23 = vadd.f32 %v100_v20, %v52_v16  ;;  %v115_v29 = vmul.f32 0.01, %v104_v21  ;;  %vm111_vm2 = vcmp.gt.f32.partialorder %v104_v21, 0.0 }
  0x8f   :  { %v114_v31 = vmul.f32 0.01, %v101_v23  ;;  %vm110_vm3 = vcmp.gt.f32.partialorder %v101_v23, 0.0  ;;  %v119_v32 = vsel %vm111_vm2, %v104_v21, %v115_v29 }
  0x91   :  { %v118_v34 = vsel %vm110_vm3, %v101_v23, %v114_v31 }
  0x92   :  { %v106_v22 = vpop.f32.mrf.mxu3 }
  0x93   :  { %v107_v24 = vadd.f32 %v106_v22, %v62_v13 }
  0x95   :  { %vm112_vm1 = vcmp.gt.f32.partialorder %v107_v24, 0.0  ;;  %v116_v28 = vmul.f32 0.01, %v107_v24 }
  0x97   :  { %v120_v30 = vsel %vm112_vm1, %v107_v24, %v116_v28 }
  0x98   :  { %154 = vmatpush.msra.mxu1 %v120_v30 }
  0x9a   :  { %155 = vmatpush.msra.mxu1 %v119_v32 }
  0x9c   :  { %156 = vmatpush.msra.mxu1 %v118_v34 }
  0x9e   :  { %157 = vmatpush.msra.mxu1 %v117_v36 }
  0x9f   :  { %255 = vmatmul.msk.f32.vlgmr.msra.gmra.mxu1 %vm135_vm5, %v121_v35 }
  0xa7   :  { %256 = vmatmul.msk.f32.gmra.mxu1 %vm135_vm5, %v122_v37 }
 0x11c   :  { %v159_v39 = vpop.f32.mrf.mxu1 }
 0x11d   :  { %v160_v41 = vadd.f32 %v159_v39, %v128_v40 }
 0x11f   :  { %v167_v45 = vmul.f32 0.01, %v160_v41  ;;  %vm165_vm7 = vcmp.gt.f32.partialorder %v160_v41, 0.0 }
 0x121   :  { %v169_v48 = vsel %vm165_vm7, %v160_v41, %v167_v45 }
 0x124   :  { %v162_v42 = vpop.f32.mrf.mxu1 }
 0x125   :  { %v163_v43 = vadd.f32 %v162_v42, %v133_v38 }
 0x127   :  { %vm166_vm6 = vcmp.gt.f32.partialorder %v163_v43, 0.0  ;;  %v168_v44 = vmul.f32 0.01, %v163_v43 }
 0x129   :  { %v170_v46 = vsel %vm166_vm6, %v163_v43, %v168_v44 }
 0x12a   :  { %195 = vmatpush.msra.mxu2 %v170_v46 }
 0x12c   :  { %196 = vmatpush.msra.mxu2 %v169_v48 }
 0x12d   :  { %257 = vmatmul.msk.f32.vlgmr.msra.gmra.mxu2 %vm64_vm0, %v171_v47 }
 0x1b0   :  { %v198_v50 = vpop.f32.mrf.mxu2 }
 0x1b1   :  { %v199_v51 = vadd.f32 %v198_v50, %v176_v49 }
 0x1b3   :  { %vm201_vm8 = vcmp.gt.f32.partialorder %v199_v51, 0.0  ;;  %v202_v52 = vmul.f32 0.01, %v199_v51 }
 0x1b5   :  { %v203_v54 = vsel %vm201_vm8, %v199_v51, %v202_v52 }
 0x1b6   :  { %v210_v55 = vmul.f32 %v208_v53, %v203_v54 }
 0x1b8   :  { %v212_v56 = vsel %vm211_vm9, %v210_v55, 0.0 }
 0x1b9   :  { %v213_v57 = vrot.slane %v212_v56, 4 }
 0x1bb   :  { %v214_v58 = vadd.f32 %v213_v57, %v212_v56 }
 0x1bd   :  { %v215_v59 = vrot.slane %v214_v58, 2 }
 0x1bf   :  { %v216_v60 = vadd.f32 %v215_v59, %v214_v58 }
 0x1c1   :  { %v217_v62 = vrot.slane %v216_v60, 1 }
 0x1c3   :  { %v218_v0 = vadd.f32 %v217_v62, %v216_v60 }
 0x1c5   :  { %v226_v1 = vadd.f32 %v225_v63, %v218_v0 }
 0x1c7   :  { %v227_v2 = vsub.f32 0.0, %v226_v1 }
 0x1c9   :  { %v228_v3 = vmul.f32 1.442695, %v227_v2 }
 0x1cb   :  { %264 = vpow2.f32 %v228_v3 }
 0x1d1   :  { %v265_v4 = vpop.eup %264 }
 0x1d2   :  { %v230_v5 = vadd.f32 1.0, %v265_v4 }
 0x1d4   :  { %266 = vrcp.f32 %v230_v5 }
 0x1da   :  { %v267_v6 = vpop.eup %266 }
 0x1db   :  { %233 = vst.msk [vmem:[#allocation3] sm:$0x1] %vm232_vm10, %v267_v6 }
 0x1dc   :  { %244 = dma.vmem_to_hbm [thread:$0]  %s240_s5, 16, %s242_s17, [#allocation4]  }
 0x1dd   :  { %292 = dma.done.wait [#allocation4], 16  }
 0x1de   :  { %293 = vsyncadd [#allocation4], 4294967280 }
 0x1df   :  { %249 = vsyncpa [#allocation4], 1 }

</bundles_post_ra>
